<compile_context>
chip_gen: v5e
topology: v5e:2x2
jax: 0.10.0
libtpu: 0.0.40
codegen_flags: <defaults>
</compile_context>

<pallas_src>
import functools

import jax
import jax.numpy as jnp
from jax.experimental import pallas as pl
from jax.experimental.pallas import tpu as pltpu


def _round_up(v, m):
    return ((v + m - 1) // m) * m


def _taylor_kan_kernel(x_ref, w_ref, bias_ref, o_ref, *, degree, operand_dtype):
    # x_ref:    (bm, dp)                  padded input tile
    # w_ref:    (max(degree-1,1)*dp, op)  packed per-degree weights (grid-invariant)
    # bias_ref: (1, op)                   bias with degree-0 term folded in
    # o_ref:    (bm, op)                  output tile
    x = x_ref[...].astype(jnp.float32)          # power chain in f32 for accuracy
    bm = x.shape[0]
    op = o_ref.shape[1]

    acc = jnp.broadcast_to(bias_ref[...].astype(jnp.float32), (bm, op))

    if degree >= 2:
        # Build [x^1, x^2, ..., x^(degree-1)] concatenated along K (lane-aligned:
        # dp is a multiple of 128). Only the matmul operand is cast down.
        pows = []
        x_pow = x
        for i in range(1, degree):
            pows.append(x_pow.astype(operand_dtype))
            if i + 1 < degree:
                x_pow = x_pow * x
        lhs = pows[0] if len(pows) == 1 else jnp.concatenate(pows, axis=-1)
        acc = acc + jnp.dot(lhs, w_ref[...], preferred_element_type=jnp.float32)

    o_ref[...] = acc.astype(o_ref.dtype)


def prepare_taylor_kan_weights(coeffs, bias, operand_dtype):
    """Pack coefficients once (loop-invariant; cache / precompute in real models).

    coeffs: (out_dim, input_dim, degree), bias: (1, out_dim) or None.
    Returns (w_packed, bias_packed, dp, op):
      w_packed:    (max(degree-1, 1) * dp, op) in operand_dtype, zero-padded
      bias_packed: (1, op) f32 with the degree-0 term folded in.
    """
    out_dim, input_dim, degree = coeffs.shape
    dp = _round_up(input_dim, 128)
    op = _round_up(out_dim, 128)

    # (degree, input_dim, out_dim): each slice ready for x @ C_i
    coeffs_t = jnp.transpose(coeffs, (2, 1, 0)).astype(jnp.float32)

    # Fold degree-0: x**0 == 1 for every element (matches torch, incl. 0**0 == 1),
    # so its contribution is the constant vector sum_d C_0[o, d].
    bias_eff = coeffs_t[0].sum(axis=0, keepdims=True)          # (1, out_dim)
    if bias is not None:
        bias_eff = bias_eff + bias.astype(jnp.float32)
    bias_packed = jnp.zeros((1, op), jnp.float32).at[:, :out_dim].set(bias_eff)

    n_deg = max(degree - 1, 1)
    w = jnp.zeros((n_deg, dp, op), jnp.float32)
    if degree >= 2:
        w = w.at[:, :input_dim, :out_dim].set(coeffs_t[1:])
    w_packed = w.reshape(n_deg * dp, op).astype(operand_dtype)
    return w_packed, bias_packed, dp, op


def taylor_kan_forward(x, coeffs, bias=None, *, block_rows=256):
    """x: (..., input_dim); coeffs: (out_dim, input_dim, degree); bias: (1, out_dim)."""
    out_dim, input_dim, degree = coeffs.shape
    orig_shape = x.shape
    x2 = x.reshape(-1, input_dim)
    n = x2.shape[0]

    # bf16 matmul operands for bf16 inputs; everything else stays f32.
    operand_dtype = jnp.bfloat16 if x.dtype == jnp.bfloat16 else jnp.float32

    w_packed, bias_packed, dp, op = prepare_taylor_kan_weights(
        coeffs, bias, operand_dtype
    )
    kdim = w_packed.shape[0]

    # Row tile: large (amortize grid overhead, fill MXU M) but capped for tiny N.
    block_rows = _round_up(max(block_rows, 8), 8)
    bm = min(block_rows, _round_up(n, 8))
    n_pad = _round_up(n, bm)

    # Zero-pad rows and lanes; padded x columns are 0 so x**i (i>=1) contributes 0,
    # and padded weight rows/cols are 0, so results are exact after slicing.
    x2p = jnp.pad(x2, ((0, n_pad - n), (0, dp - input_dim)))

    kernel = functools.partial(
        _taylor_kan_kernel, degree=degree, operand_dtype=operand_dtype
    )

    y = pl.pallas_call(
        kernel,
        out_shape=jax.ShapeDtypeStruct((n_pad, op), x.dtype),
        grid_spec=pltpu.PrefetchScalarGridSpec(
            num_scalar_prefetch=0,
            grid=(n_pad // bm,),
            in_specs=[
                pl.BlockSpec((bm, dp), lambda i: (i, 0)),
                # grid-invariant weights / bias (constant index_map -> fetched once)
                pl.BlockSpec((kdim, op), lambda i: (0, 0)),
                pl.BlockSpec((1, op), lambda i: (0, 0)),
            ],
            out_specs=pl.BlockSpec((bm, op), lambda i: (i, 0)),
        ),
        compiler_params=pltpu.CompilerParams(
            dimension_semantics=("parallel",),
        ),
    )(x2p, w_packed, bias_packed)

    y = y[:n, :out_dim]
    return y.reshape(orig_shape[:-1] + (out_dim,))


def taylor_kan_reference(x, coeffs, bias):
    """Direct transcription of the PyTorch forward (pure JAX, f32)."""
    out_dim, input_dim, degree = coeffs.shape
    x2 = x.reshape(-1, input_dim).astype(jnp.float32)
    y = jnp.zeros((x2.shape[0], out_dim), jnp.float32)
    x_exp = x2[:, None, :]                          # (N, 1, input_dim)
    for i in range(degree):
        term = (x_exp ** i) * coeffs[:, :, i].astype(jnp.float32)
        y = y + term.sum(axis=-1)
    if bias is not None:
        y = y + bias.astype(jnp.float32)
    return y.reshape(x.shape[:-1] + (out_dim,)).astype(x.dtype)


if __name__ == "__main__":
    # Small shapes consistent with the module: tokens (batch, seq, input_dim)
    batch, seq = 2, 8
    input_dim, out_dim, degree = 32, 16, 3

    key = jax.random.PRNGKey(0)
    kx, kc = jax.random.split(key)

    x = jax.random.normal(kx, (batch, seq, input_dim), dtype=jnp.float32)
    # coeffs ~ randn(out_dim, input_dim, degree) * 0.01, bias = zeros(1, out_dim)
    coeffs = (
        jax.random.normal(kc, (out_dim, input_dim, degree), dtype=jnp.float32) * 0.01
    )
    bias = jnp.zeros((1, out_dim), dtype=jnp.float32)

    fwd = jax.jit(taylor_kan_forward)
    y = fwd(x, coeffs, bias)
    y = jax.block_until_ready(y)

    y_ref = taylor_kan_reference(x, coeffs, bias)
    assert y.shape == (batch, seq, out_dim)
    assert jnp.allclose(y, y_ref, atol=1e-5, rtol=1e-5), (
        float(jnp.max(jnp.abs(y - y_ref)))
    )

    print("KERNEL_OK")
</pallas_src>

<mosaic_0001>
module attributes {stable_mosaic.version = 11 : i64} {
  func.func @_taylor_kan_kernel(%arg0: i32, %arg1: memref<16x128xf32, #tpu.memory_space<vmem>>, %arg2: memref<256x128xf32, #tpu.memory_space<vmem>>, %arg3: memref<1x128xf32, #tpu.memory_space<vmem>>, %arg4: memref<16x128xf32, #tpu.memory_space<vmem>>) attributes {dimension_semantics = [#tpu.dimension_semantics<parallel>], iteration_bounds = array<i64: 1>, scalar_prefetch = 0 : i64, scratch_operands = 0 : i64, tpu.core_type = #tpu.core_type<tc>, window_params = [{transform_indices = @transform_0, window_bounds = array<i64: 16, 128>}, {pipeline_mode = #tpu.pipeline_mode<synchronous>, transform_indices = @transform_1, window_bounds = array<i64: 256, 128>}, {pipeline_mode = #tpu.pipeline_mode<synchronous>, transform_indices = @transform_2, window_bounds = array<i64: 1, 128>}, {transform_indices = @transform_3, window_bounds = array<i64: 16, 128>}]} {
    %c0 = arith.constant 0 : index
    %c0_0 = arith.constant 0 : index
    %0 = vector.load %arg1[%c0, %c0_0] : memref<16x128xf32, #tpu.memory_space<vmem>>, vector<16x128xf32>
    %c0_1 = arith.constant 0 : index
    %c0_2 = arith.constant 0 : index
    %1 = vector.load %arg3[%c0_1, %c0_2] : memref<1x128xf32, #tpu.memory_space<vmem>>, vector<1x128xf32>
    %2 = vector.shape_cast %1 : vector<1x128xf32> to vector<1x128xf32>
    %3 = vector.broadcast %2 : vector<1x128xf32> to vector<16x128xf32>
    %4 = arith.mulf %0, %0 : vector<16x128xf32>
    %5 = tpu.concatenate %0, %4 in 1 : vector<16x128xf32>, vector<16x128xf32> -> vector<16x256xf32>
    %c0_3 = arith.constant 0 : index
    %c0_4 = arith.constant 0 : index
    %6 = vector.load %arg2[%c0_3, %c0_4] : memref<256x128xf32, #tpu.memory_space<vmem>>, vector<256x128xf32>
    %cst = arith.constant dense<0.000000e+00> : vector<16x128xf32>
    %7 = tpu.matmul %5, %6, %cst {dimension_numbers = #tpu.dot_dimension_numbers<[1], [0], [0], [1], [0, 0, 1, 1], [], []>} : vector<16x256xf32>, vector<256x128xf32>, vector<16x128xf32> -> vector<16x128xf32>
    %8 = arith.addf %3, %7 : vector<16x128xf32>
    %c0_5 = arith.constant 0 : index
    %c0_6 = arith.constant 0 : index
    %9 = vector.load %arg4[%c0_5, %c0_6] : memref<16x128xf32, #tpu.memory_space<vmem>>, vector<16x128xf32>
    tpu.vector_store %arg4[%c0_5, %c0_6], %8 {strides = array<i32>} : memref<16x128xf32, #tpu.memory_space<vmem>>, vector<16x128xf32>,
    return
  }
  func.func @transform_0(%arg0: i32) -> (i32, i32) {
    %c0_i32 = arith.constant 0 : i32
    %c0_i32_0 = arith.constant 0 : i32
    return %arg0, %c0_i32 : i32, i32
  }
  func.func @transform_1(%arg0: i32) -> (i32, i32) {
    %c0_i32 = arith.constant 0 : i32
    %c0_i32_0 = arith.constant 0 : i32
    %c0_i32_1 = arith.constant 0 : i32
    return %c0_i32, %c0_i32_0 : i32, i32
  }
  func.func @transform_2(%arg0: i32) -> (i32, i32) {
    %c0_i32 = arith.constant 0 : i32
    %c0_i32_0 = arith.constant 0 : i32
    %c0_i32_1 = arith.constant 0 : i32
    return %c0_i32, %c0_i32_0 : i32, i32
  }
  func.func @transform_3(%arg0: i32) -> (i32, i32) {
    %c0_i32 = arith.constant 0 : i32
    %c0_i32_0 = arith.constant 0 : i32
    return %arg0, %c0_i32 : i32, i32
  }
}

</mosaic_0001>

<bundles_post_ra>
// kernel: taylor_kan_forward.1
= control target key start
LH: loop header
LB: loop body
LE: loop exit
PB: predicated region body
PF: predicated region fallthrough
CT: control target
= control target key end

     0   :  { %s272_s1 = inlined_call_operand.vmem [shape: f32[256,128], index: 1, kind: input, shape index: {}]   ;;  %s273_s0 = inlined_call_operand.vmem [shape: f32[16,128], index: 0, kind: input, shape index: {}]   ;;  %s274_s2 = inlined_call_operand.vmem [shape: f32[1,128], index: 2, kind: input, shape index: {}]   ;;  %s275_s3 = inlined_call_operand.vmem [shape: f32[16,128], index: 3, kind: output, shape index: {}]  }
   0x1   :  { %v37_v0 = vld [vmem:[%s272_s1 + $0x78] sm:$0xff]  ;;  %v36_v2 = vld [vmem:[%s272_s1 + $0x70] sm:$0xff]  ;;  %v35_v4 = vld [vmem:[%s272_s1 + $0x68] sm:$0xff] }
   0x2   :  { %v53_v1 = vld [vmem:[%s272_s1 + $0xf8] sm:$0xff]  ;;  %108 = vmatpush.msra.mxu2 %v37_v0  ;;  %v52_v3 = vld [vmem:[%s272_s1 + $0xf0] sm:$0xff]  ;;  %v51_v5 = vld [vmem:[%s272_s1 + $0xe8] sm:$0xff]  ;;  %54 = vmatpush.msra.mxu0 %v37_v0 }
   0x3   :  { %124 = vmatpush.msra.mxu3 %v53_v1  ;;  %77 = vmatpush.msra.mxu1 %v53_v1  ;;  %v34_v6 = vld [vmem:[%s272_s1 + $0x60] sm:$0xff]  ;;  %v33_v8 = vld [vmem:[%s272_s1 + $0x58] sm:$0xff]  ;;  %v32_v10 = vld [vmem:[%s272_s1 + $0x50] sm:$0xff] }
   0x4   :  { %109 = vmatpush.msra.mxu2 %v36_v2  ;;  %v50_v7 = vld [vmem:[%s272_s1 + $0xe0] sm:$0xff]  ;;  %55 = vmatpush.msra.mxu0 %v36_v2  ;;  %v49_v9 = vld [vmem:[%s272_s1 + $0xd8] sm:$0xff]  ;;  %v48_v11 = vld [vmem:[%s272_s1 + $0xd0] sm:$0xff] }
   0x5   :  { %125 = vmatpush.msra.mxu3 %v52_v3  ;;  %78 = vmatpush.msra.mxu1 %v52_v3  ;;  %v31_v12 = vld [vmem:[%s272_s1 + $0x48] sm:$0xff]  ;;  %v30_v14 = vld [vmem:[%s272_s1 + $0x40] sm:$0xff]  ;;  %v29_v16 = vld [vmem:[%s272_s1 + $0x38] sm:$0xff] }
   0x6   :  { %110 = vmatpush.msra.mxu2 %v35_v4  ;;  %56 = vmatpush.msra.mxu0 %v35_v4  ;;  %v47_v13 = vld [vmem:[%s272_s1 + $0xc8] sm:$0xff]  ;;  %v46_v15 = vld [vmem:[%s272_s1 + $0xc0] sm:$0xff]  ;;  %v45_v17 = vld [vmem:[%s272_s1 + $0xb8] sm:$0xff] }
   0x7   :  { %126 = vmatpush.msra.mxu3 %v51_v5  ;;  %79 = vmatpush.msra.mxu1 %v51_v5  ;;  %v28_v18 = vld [vmem:[%s272_s1 + $0x30] sm:$0xff]  ;;  %v27_v20 = vld [vmem:[%s272_s1 + $0x28] sm:$0xff]  ;;  %v26_v22 = vld [vmem:[%s272_s1 + $0x20] sm:$0xff] }
   0x8   :  { %111 = vmatpush.msra.mxu2 %v34_v6  ;;  %57 = vmatpush.msra.mxu0 %v34_v6  ;;  %v44_v19 = vld [vmem:[%s272_s1 + $0xb0] sm:$0xff]  ;;  %v43_v21 = vld [vmem:[%s272_s1 + $0xa8] sm:$0xff]  ;;  %v42_v23 = vld [vmem:[%s272_s1 + $0xa0] sm:$0xff] }
   0x9   :  { %127 = vmatpush.msra.mxu3 %v50_v7  ;;  %80 = vmatpush.msra.mxu1 %v50_v7  ;;  %v25_v24 = vld [vmem:[%s272_s1 + $0x18] sm:$0xff]  ;;  %v24_v26 = vld [vmem:[%s272_s1 + $0x10] sm:$0xff]  ;;  %v15_v28 = vld [vmem:[%s273_s0 + $0x8] sm:$0xff] }
   0xa   :  { %112 = vmatpush.msra.mxu2 %v33_v8  ;;  %58 = vmatpush.msra.mxu0 %v33_v8  ;;  %v41_v25 = vld [vmem:[%s272_s1 + $0x98] sm:$0xff]  ;;  %v40_v27 = vld [vmem:[%s272_s1 + $0x90] sm:$0xff]  ;;  %v23_v29 = vld [vmem:[%s272_s1 + $0x8] sm:$0xff]  ;;  %v21_v34 = vmul.f32 %v15_v28, %v15_v28 }
   0xb   :  { %128 = vmatpush.msra.mxu3 %v49_v9  ;;  %81 = vmatpush.msra.mxu1 %v49_v9  ;;  %v39_v30 = vld [vmem:[%s272_s1 + $0x88] sm:$0xff]  ;;  %v14_v31 = vld [vmem:[%s273_s0] sm:$0xff] }
   0xc   :  { %113 = vmatpush.msra.mxu2 %v32_v10  ;;  %59 = vmatpush.msra.mxu0 %v32_v10  ;;  %v22_v32 = vld [vmem:[%s272_s1] sm:$0xff]  ;;  %v20_v35 = vmul.f32 %v14_v31, %v14_v31 }
   0xd   :  { %129 = vmatpush.msra.mxu3 %v48_v11  ;;  %82 = vmatpush.msra.mxu1 %v48_v11  ;;  %v38_v33 = vld [vmem:[%s272_s1 + $0x80] sm:$0xff] }
   0xe   :  { %114 = vmatpush.msra.mxu2 %v31_v12  ;;  %60 = vmatpush.msra.mxu0 %v31_v12  ;;  %v140_v36 = vld [vmem:[%s274_s2] ss:$0 sm:$0xff] }
   0xf   :  { %130 = vmatpush.msra.mxu3 %v47_v13  ;;  %83 = vmatpush.msra.mxu1 %v47_v13 }
  0x10   :  { %115 = vmatpush.msra.mxu2 %v30_v14  ;;  %61 = vmatpush.msra.mxu0 %v30_v14 }
  0x11   :  { %131 = vmatpush.msra.mxu3 %v46_v15  ;;  %84 = vmatpush.msra.mxu1 %v46_v15 }
  0x12   :  { %116 = vmatpush.msra.mxu2 %v29_v16  ;;  %62 = vmatpush.msra.mxu0 %v29_v16 }
  0x13   :  { %132 = vmatpush.msra.mxu3 %v45_v17  ;;  %85 = vmatpush.msra.mxu1 %v45_v17 }
  0x14   :  { %117 = vmatpush.msra.mxu2 %v28_v18  ;;  %63 = vmatpush.msra.mxu0 %v28_v18 }
  0x15   :  { %133 = vmatpush.msra.mxu3 %v44_v19  ;;  %86 = vmatpush.msra.mxu1 %v44_v19 }
  0x16   :  { %118 = vmatpush.msra.mxu2 %v27_v20  ;;  %64 = vmatpush.msra.mxu0 %v27_v20 }
  0x17   :  { %134 = vmatpush.msra.mxu3 %v43_v21  ;;  %87 = vmatpush.msra.mxu1 %v43_v21 }
  0x18   :  { %119 = vmatpush.msra.mxu2 %v26_v22  ;;  %65 = vmatpush.msra.mxu0 %v26_v22 }
  0x19   :  { %135 = vmatpush.msra.mxu3 %v42_v23  ;;  %88 = vmatpush.msra.mxu1 %v42_v23 }
  0x1a   :  { %120 = vmatpush.msra.mxu2 %v25_v24  ;;  %66 = vmatpush.msra.mxu0 %v25_v24 }
  0x1b   :  { %136 = vmatpush.msra.mxu3 %v41_v25  ;;  %89 = vmatpush.msra.mxu1 %v41_v25 }
  0x1c   :  { %121 = vmatpush.msra.mxu2 %v24_v26  ;;  %67 = vmatpush.msra.mxu0 %v24_v26 }
  0x1d   :  { %137 = vmatpush.msra.mxu3 %v40_v27  ;;  %90 = vmatpush.msra.mxu1 %v40_v27 }
  0x1e   :  { %122 = vmatpush.msra.mxu2 %v23_v29  ;;  %68 = vmatpush.msra.mxu0 %v23_v29 }
  0x1f   :  { %138 = vmatpush.msra.mxu3 %v39_v30  ;;  %91 = vmatpush.msra.mxu1 %v39_v30 }
  0x20   :  { %123 = vmatpush.msra.mxu2 %v22_v32  ;;  %69 = vmatpush.msra.mxu0 %v22_v32 }
  0x21   :  { %139 = vmatpush.msra.mxu3 %v38_v33  ;;  %73 = vmatmul.f32.vlgmr.msra.gmra.mxu2 %v15_v28 }
  0x22   :  { %96 = vmatmul.f32.vlgmr.msra.gmra.mxu3 %v21_v34  ;;  %92 = vmatpush.msra.mxu1 %v38_v33 }
  0x23   :  { %70 = vmatmul.f32.vlgmr.msra.gmra.mxu0 %v14_v31  ;;  %93 = vmatmul.f32.vlgmr.msra.gmra.mxu1 %v20_v35 }
  0xa0   :  { %v71_v37 = vpop.f32.mrf.mxu0  ;;  %v94_v38 = vpop.f32.mrf.mxu1 }
  0xa1   :  { %v95_v39 = vadd.f32 %v94_v38, %v71_v37 }
  0xa3   :  { %v100_v40 = vadd.f32 %v140_v36, %v95_v39 }
  0xa4   :  { %v74_v41 = vpop.f32.mrf.mxu2 }
  0xa5   :  { %v97_v42 = vpop.f32.mrf.mxu3  ;;  %102 = vst [vmem:[%s275_s3] sm:$0xff] %v100_v40 }
  0xa6   :  { %v98_v43 = vadd.f32 %v97_v42, %v74_v41 }
  0xa8   :  { %v101_v44 = vadd.f32 %v140_v36, %v98_v43 }
  0xaa   :  { %103 = vst [vmem:[%s275_s3 + $0x8] sm:$0xff] %v101_v44 }

</bundles_post_ra>
